<compile_context>
chip_gen: v7x
topology: tpu7x:2x2x1
jax: 0.10.0
libtpu: 0.0.40
codegen_flags: <defaults>
</compile_context>

<pallas_src>
import functools

import jax
import jax.numpy as jnp
from jax.experimental import pallas as pl
from jax.experimental.pallas import tpu as pltpu


def _round_up(x, m):
    return ((x + m - 1) // m) * m


def _mdm_kernel(pos_ref, rot_ref, vel_ref, lin_ref, ang_ref, out_ref, *,
                n_joints, n_lin, tile_rows, strip_rows, n_strips,
                resident_head):
    """Assemble `tile_rows` feature rows, one `strip_rows` strip at a time.

    pos_ref : (tile_rows, J*3)            row-major flatten of positions
    rot_ref : (tile_rows, J*6)            row-major flatten of rotations
    vel_ref : (tile_rows, J*3)            row-major flatten of velocities
    lin_ref : (R_pad or tile_rows, C*2)   interleaved (x, z) root-linear chans
    ang_ref : (R_pad or tile_rows, A)     flattened angular features
    out_ref : (tile_rows, F)
    """

    def emit(row_sl, head_sl):
        pos = pos_ref[row_sl, :]
        rot = rot_ref[row_sl, :]
        vel = vel_ref[row_sl, :]
        lin = lin_ref[head_sl, :]
        ang = ang_ref[head_sl, :]

        # r_x = linear[..., 0], r_z = linear[..., 1]: deinterleave on loaded
        # values (pure vreg slices feeding the concatenate).  C == 1 for MDM,
        # so this is just two 1-lane slices.
        r_x = [lin[:, 2 * c:2 * c + 1] for c in range(n_lin)]
        r_z = [lin[:, 2 * c + 1:2 * c + 2] for c in range(n_lin)]

        r_pos_y = pos[:, 1:2]                          # positions[:, :, 0, 1]
        j_p = pos[:, 3:3 + (n_joints - 1) * 3]         # positions[:, :, 1:, :]
        j_v = vel                                      # velocities (flattened)
        j_r = rot[:, 6:6 + (n_joints - 1) * 6]         # rotations[:, :, 1:, ...]

        row_block = jnp.concatenate(
            [ang, *r_x, *r_z, r_pos_y, j_p, j_v, j_r], axis=-1)
        out_ref[row_sl, :] = row_block.astype(out_ref.dtype)

    tile_base = pl.program_id(0) * tile_rows           # global first row of tile

    if n_strips == 1:
        # Tiny problem: one strip == the whole (single) tile.
        head_sl = pl.ds(tile_base, strip_rows) if resident_head else slice(None)
        emit(slice(None), head_sl)
    else:
        @pl.loop(0, n_strips)
        def _(s):
            r0 = pl.multiple_of(s * strip_rows, strip_rows)
            rows = pl.ds(r0, strip_rows)
            if resident_head:
                g0 = pl.multiple_of(tile_base + s * strip_rows, strip_rows)
                head_sl = pl.ds(g0, strip_rows)
            else:
                head_sl = rows
            emit(rows, head_sl)


def mdm_representation(positions, rotations, velocities, linear, angular, *,
                       strip_rows=256, max_tile_rows=1024,
                       resident_head_max_rows=2048,
                       vmem_tile_budget_bytes=10 * 1024 * 1024):
    """Pallas TPU implementation of MDMRepresentation.forward."""
    B, T, J, _ = positions.shape
    C = linear.shape[2]                        # root-linear channels (1 for MDM)
    A = angular.shape[2] * angular.shape[3]    # flattened angular feature count
    R = B * T                                  # flattened (batch, time) rows

    out_dtype = jnp.result_type(positions.dtype, rotations.dtype,
                                velocities.dtype, linear.dtype, angular.dtype)

    # Glue: pure row-major layout collapses (no semantic compute here).
    pos2 = positions.reshape(R, J * 3)
    rot2 = rotations.reshape(R, J * 6)
    vel2 = velocities.reshape(R, J * 3)
    lin2 = linear.reshape(R, C * 2)
    ang2 = angular.reshape(R, A)

    F = A + 2 * C + 1 + (J - 1) * 3 + J * 3 + (J - 1) * 6

    assert strip_rows % 8 == 0 and max_tile_rows % strip_rows == 0

    # ---- Row-tile sizing --------------------------------------------------
    # Lane-padded, double-buffered bytes per row for the streamed operands
    # (pos, rot, vel, out, plus lin/ang in the non-resident fallback).  Cap
    # the tile so the streamed footprint stays under the budget; with the
    # <= 4 MiB resident head this stays well inside v5e's 16 MiB scoped VMEM
    # default (and v7x's 32 MiB), with headroom for Mosaic internal scratch.
    itemsize = jnp.dtype(out_dtype).itemsize
    lanes = [J * 3, J * 6, J * 3, F, C * 2, A]
    row_bytes = 2 * itemsize * sum(_round_up(l, 128) for l in lanes)
    budget_tile = max(strip_rows,
                      (vmem_tile_budget_bytes // row_bytes)
                      // strip_rows * strip_rows)
    max_tile = min(max_tile_rows, budget_tile)

    if R <= strip_rows:
        tile_r = R                       # single tiny tile (strip == tile)
    else:
        # Aim for >= 4 grid steps so read and write DMA streams overlap and
        # (on v7x) both TensorCores receive row tiles.
        tile_r = _round_up(pl.cdiv(R, 4), strip_rows)
        tile_r = max(strip_rows, min(tile_r, max_tile))
    grid = pl.cdiv(R, tile_r)

    if tile_r <= strip_rows:
        strip, n_strips = tile_r, 1
    else:
        strip, n_strips = strip_rows, tile_r // strip_rows

    # ---- linear / angular: fetch once and keep resident for moderate R ----
    resident_head = R <= resident_head_max_rows
    if resident_head:
        r_pad = grid * tile_r
        if r_pad != R:
            # Tiny pad (a few KiB of glue) so in-kernel global-row slices of
            # the resident buffers stay in bounds on the partial last tile.
            lin2 = jnp.pad(lin2, ((0, r_pad - R), (0, 0)))
            ang2 = jnp.pad(ang2, ((0, r_pad - R), (0, 0)))
        lin_spec = pl.BlockSpec((r_pad, C * 2), lambda i: (0, 0))
        ang_spec = pl.BlockSpec((r_pad, A), lambda i: (0, 0))
    else:
        lin_spec = pl.BlockSpec((tile_r, C * 2), lambda i: (i, 0))
        ang_spec = pl.BlockSpec((tile_r, A), lambda i: (i, 0))

    kernel = functools.partial(
        _mdm_kernel, n_joints=J, n_lin=C, tile_rows=tile_r, strip_rows=strip,
        n_strips=n_strips, resident_head=resident_head)

    def tiled(n):
        return pl.BlockSpec((tile_r, n), lambda i: (i, 0))

    out2 = pl.pallas_call(
        kernel,
        out_shape=jax.ShapeDtypeStruct((R, F), out_dtype),
        grid=(grid,),
        in_specs=[tiled(J * 3), tiled(J * 6), tiled(J * 3), lin_spec, ang_spec],
        out_specs=tiled(F),
        compiler_params=pltpu.CompilerParams(
            dimension_semantics=("parallel",)),
    )(pos2, rot2, vel2, lin2, ang2)

    return out2.reshape(B, T, F)


def ref_forward(positions, rotations, velocities, linear, angular):
    """Pure-JAX reference mirroring the PyTorch forward exactly."""
    B, T = positions.shape[:2]
    r_a = angular.reshape(B, T, -1)                    # Flatten(start_dim=-2)
    r_x = linear[..., 0]
    r_z = linear[..., 1]
    r_pos_y = positions[:, :, 0, 1][..., None]
    j_p = positions[:, :, 1:, :].reshape(B, T, -1)     # Flatten(start_dim=-2)
    j_r = rotations[:, :, 1:, :, :].reshape(B, T, -1)  # Flatten(start_dim=-3)
    j_v = velocities.reshape(B, T, -1)                 # Flatten(start_dim=-2)
    return jnp.concatenate((r_a, r_x, r_z, r_pos_y, j_p, j_v, j_r), axis=-1)


def _make_inputs(key, B, T, J):
    k1, k2, k3, k4, k5 = jax.random.split(key, 5)
    positions = jax.random.normal(k1, (B, T, J, 3), dtype=jnp.float32)
    rotations = jax.random.normal(k2, (B, T, J, 3, 2), dtype=jnp.float32)
    velocities = jax.random.normal(k3, (B, T, J, 3), dtype=jnp.float32)
    linear = jax.random.normal(k4, (B, T, 1, 2), dtype=jnp.float32)
    angular = jax.random.normal(k5, (B, T, 1, 1), dtype=jnp.float32)
    return positions, rotations, velocities, linear, angular


if __name__ == "__main__":
    # 1) Small shapes consistent with the module layout (single-tile path).
    args = _make_inputs(jax.random.PRNGKey(0), B=2, T=8, J=4)
    out = jax.block_until_ready(mdm_representation(*args))
    expected = ref_forward(*args)
    assert out.shape == expected.shape, (out.shape, expected.shape)
    assert jnp.allclose(out, expected), "Pallas kernel output mismatch (small)"

    # 2) Multi-tile path at realistic MDM sizes: R = 1500 rows, J = 22 joints
    #    -> 3 grid steps, 2 strips per tile, resident linear/angular with a
    #    padded partial last tile.
    args2 = _make_inputs(jax.random.PRNGKey(1), B=3, T=500, J=22)
    out2 = jax.block_until_ready(mdm_representation(*args2))
    expected2 = ref_forward(*args2)
    assert out2.shape == expected2.shape, (out2.shape, expected2.shape)
    assert jnp.allclose(out2, expected2), "Pallas kernel output mismatch (tiled)"

    # 3) Same inputs forced through the non-resident (per-step tiled) path for
    #    linear/angular to cover that branch.
    out3 = jax.block_until_ready(
        mdm_representation(*args2, resident_head_max_rows=0))
    assert jnp.allclose(out3, expected2), "Pallas kernel output mismatch (non-resident)"

    print("KERNEL_OK")
</pallas_src>

<mosaic_0001>
module attributes {stable_mosaic.version = 11 : i64} {
  func.func @_mdm_kernel(%arg0: i32, %arg1: memref<16x12xf32, #tpu.memory_space<vmem>>, %arg2: memref<16x24xf32, #tpu.memory_space<vmem>>, %arg3: memref<16x12xf32, #tpu.memory_space<vmem>>, %arg4: memref<16x2xf32, #tpu.memory_space<vmem>>, %arg5: memref<16x1xf32, #tpu.memory_space<vmem>>, %arg6: memref<16x43xf32, #tpu.memory_space<vmem>>) attributes {dimension_semantics = [#tpu.dimension_semantics<parallel>], iteration_bounds = array<i64: 1>, scalar_prefetch = 0 : i64, scratch_operands = 0 : i64, tpu.core_type = #tpu.core_type<tc>, window_params = [{transform_indices = @transform_0, window_bounds = array<i64: 16, 12>}, {transform_indices = @transform_1, window_bounds = array<i64: 16, 24>}, {transform_indices = @transform_2, window_bounds = array<i64: 16, 12>}, {pipeline_mode = #tpu.pipeline_mode<synchronous>, transform_indices = @transform_3, window_bounds = array<i64: 16, 2>}, {pipeline_mode = #tpu.pipeline_mode<synchronous>, transform_indices = @transform_4, window_bounds = array<i64: 16, 1>}, {transform_indices = @transform_5, window_bounds = array<i64: 16, 43>}]} {
    %c16_i32 = arith.constant 16 : i32
    %0 = arith.muli %arg0, %c16_i32 : i32
    %c0 = arith.constant 0 : index
    %c0_0 = arith.constant 0 : index
    %1 = vector.load %arg1[%c0, %c0_0] : memref<16x12xf32, #tpu.memory_space<vmem>>, vector<16x12xf32>
    %c0_1 = arith.constant 0 : index
    %c0_2 = arith.constant 0 : index
    %2 = vector.load %arg2[%c0_1, %c0_2] : memref<16x24xf32, #tpu.memory_space<vmem>>, vector<16x24xf32>
    %c0_3 = arith.constant 0 : index
    %c0_4 = arith.constant 0 : index
    %3 = vector.load %arg3[%c0_3, %c0_4] : memref<16x12xf32, #tpu.memory_space<vmem>>, vector<16x12xf32>
    %4 = arith.index_cast %0 : i32 to index
    %c0_5 = arith.constant 0 : index
    %5 = vector.load %arg4[%4, %c0_5] : memref<16x2xf32, #tpu.memory_space<vmem>>, vector<16x2xf32>
    %6 = arith.index_cast %0 : i32 to index
    %c0_6 = arith.constant 0 : index
    %7 = vector.load %arg5[%6, %c0_6] : memref<16x1xf32, #tpu.memory_space<vmem>>, vector<16x1xf32>
    %8 = vector.extract_strided_slice %5 {offsets = [0, 0], sizes = [16, 1], strides = [1, 1]} : vector<16x2xf32> to vector<16x1xf32>
    %9 = vector.extract_strided_slice %5 {offsets = [0, 1], sizes = [16, 1], strides = [1, 1]} : vector<16x2xf32> to vector<16x1xf32>
    %10 = vector.extract_strided_slice %1 {offsets = [0, 1], sizes = [16, 1], strides = [1, 1]} : vector<16x12xf32> to vector<16x1xf32>
    %11 = vector.extract_strided_slice %1 {offsets = [0, 3], sizes = [16, 9], strides = [1, 1]} : vector<16x12xf32> to vector<16x9xf32>
    %12 = vector.extract_strided_slice %2 {offsets = [0, 6], sizes = [16, 18], strides = [1, 1]} : vector<16x24xf32> to vector<16x18xf32>
    %13 = tpu.concatenate %7, %8, %9, %10, %11, %3, %12 in 1 : vector<16x1xf32>, vector<16x1xf32>, vector<16x1xf32>, vector<16x1xf32>, vector<16x9xf32>, vector<16x12xf32>, vector<16x18xf32> -> vector<16x43xf32>
    %c0_7 = arith.constant 0 : index
    %c0_8 = arith.constant 0 : index
    %14 = vector.load %arg6[%c0_7, %c0_8] : memref<16x43xf32, #tpu.memory_space<vmem>>, vector<16x43xf32>
    tpu.vector_store %arg6[%c0_7, %c0_8], %13 {strides = array<i32>} : memref<16x43xf32, #tpu.memory_space<vmem>>, vector<16x43xf32>,
    return
  }
  func.func @transform_0(%arg0: i32) -> (i32, i32) {
    %c0_i32 = arith.constant 0 : i32
    %c0_i32_0 = arith.constant 0 : i32
    return %arg0, %c0_i32 : i32, i32
  }
  func.func @transform_1(%arg0: i32) -> (i32, i32) {
    %c0_i32 = arith.constant 0 : i32
    %c0_i32_0 = arith.constant 0 : i32
    return %arg0, %c0_i32 : i32, i32
  }
  func.func @transform_2(%arg0: i32) -> (i32, i32) {
    %c0_i32 = arith.constant 0 : i32
    %c0_i32_0 = arith.constant 0 : i32
    return %arg0, %c0_i32 : i32, i32
  }
  func.func @transform_3(%arg0: i32) -> (i32, i32) {
    %c0_i32 = arith.constant 0 : i32
    %c0_i32_0 = arith.constant 0 : i32
    %c0_i32_1 = arith.constant 0 : i32
    return %c0_i32, %c0_i32_0 : i32, i32
  }
  func.func @transform_4(%arg0: i32) -> (i32, i32) {
    %c0_i32 = arith.constant 0 : i32
    %c0_i32_0 = arith.constant 0 : i32
    %c0_i32_1 = arith.constant 0 : i32
    return %c0_i32, %c0_i32_0 : i32, i32
  }
  func.func @transform_5(%arg0: i32) -> (i32, i32) {
    %c0_i32 = arith.constant 0 : i32
    %c0_i32_0 = arith.constant 0 : i32
    return %arg0, %c0_i32 : i32, i32
  }
}

</mosaic_0001>

<bundles_post_ra>
// kernel: tpu_custom_call.1
= control target key start
LH: loop header
LB: loop body
LE: loop exit
PB: predicated region body
PF: predicated region fallthrough
CT: control target
= control target key end

     0   :  { %10 = vsyncpa [#allocation3], 0  ;;  %s272_s0 = inlined_call_operand.vmem [shape: f32[16,12], index: 0, kind: input, shape index: {}]   ;;  %s273_s1 = inlined_call_operand.vmem [shape: f32[16,24], index: 1, kind: input, shape index: {}]   ;;  %s274_s2 = inlined_call_operand.hbm [shape: f32[16,12], index: 2, kind: input, shape index: {}]   ;;  %s275_s3 = inlined_call_operand.vmem [shape: f32[16,2], index: 3, kind: input, shape index: {}]   ;;  %s276_s4 = inlined_call_operand.vmem [shape: f32[16,1], index: 4, kind: input, shape index: {}]   ;;  %s277_s5 = inlined_call_operand.hbm [shape: f32[16,43], index: 5, kind: output, shape index: {}]  }
   0x1   :  { %11 = vsyncpa [#allocation4], 0  ;;  %s180_s18 = smov [#allocation2]   ;;  %s132_s22 = scalar_lea.hbm %s274_s2, 256 }
   0x2   :  { %s21_s19 = sshll.u32 %s180_s18, 4  ;;  %p133_p0 = scmp.ne.s32.totalorder %s274_s2, %s132_s22  ;;  %s22_s19 = int_to_ptr.vmem [resolvable:$true] %s21_s19 }
   0x3   :  { %p136_p1 = scmp.lt.u32.totalorder %s132_s22, %s274_s2 }
   0x5   :  { %p138_p2 = pnand %p136_p1, %p133_p0 }
   0x7   :  { %141 = shalt.err (!%p138_p2)
}
   0x8   :  { %s142_s27 = scalar_lea.vmem %s22_s19, 256  ;;  %p147_p4 = scmp.lt.s32.totalorder %s22_s19, %s22_s19 }
   0x9   :  { %p143_p3 = scmp.ne.s32.totalorder %s22_s19, %s142_s27  ;;  %p148_p5 = scmp.lt.s32.totalorder %s142_s27, %s142_s27 }
   0xb   :  { %p149_p6 = por %p148_p5, %p147_p4 }
   0xd   :  { %p150_p7 = pnand %p149_p6, %p143_p3 }
   0xf   :  { %153 = shalt.err (!%p150_p7)
}
  0x10   :  { %s181_s28 = smov 128   ;;  %s182_s29 = smov 8  }
  0x11   :  { %27 = dma.hbm_to_vmem [thread:$0]  %s274_s2, 256, %s22_s19, [#allocation3], %s181_s28, %s181_s28, %s182_s29  }
  0x12   :  { %176 = dma.done.wait [#allocation3], 256  }
  0x13   :  { %177 = vsyncadd [#allocation3], 4294967040  ;;  %v43_v0 = vld [vmem:[%s275_s3] sm:$0xff]  ;;  %s183_s11 = smov 1   ;;  %s184_s12 = smov 2   ;;  %v44_v2 = vld [vmem:[%s275_s3 + $0x8] sm:$0xff] }
  0x14   :  { %v36_v1 = vld [vmem:[%s272_s0] sm:$0xff]  ;;  %50 = vrot.lane.b32.xlu0 %v43_v0, %s183_s11  ;;  %v37_v3 = vld [vmem:[%s272_s0 + $0x8] sm:$0xff]  ;;  %s185_s16 = smov 13   ;;  %s186_s3 = smov 19   ;;  %vm86_vm0 = vcmask 7168   ;;  %vm89_vm1 = vcmask 15360  }
  0x15   :  { %58 = vrot.lane.b32.xlu1 %v36_v1, %s184_s12  ;;  %v40_v4 = vld [vmem:[#allocation2] sm:$0xff]  ;;  %v41_v5 = vld [vmem:[#allocation2 + $0x8] sm:$0xff]  ;;  %vm92_vm2 = vcmask 23552   ;;  %vm95_vm3 = vcmask 31744   ;;  %vm98_vm4 = vcmask 105472   ;;  %vm101_vm5 = vcmask 203776  }
  0x16   :  { %v38_v6 = vld [vmem:[%s273_s1] sm:$0xff]  ;;  %v39_v7 = vld [vmem:[%s273_s1 + $0x8] sm:$0xff]  ;;  %s187_s1 = smov [#allocation5]   ;;  %vm104_vm6 = vcmask 351232  }
  0x17   :  { %v47_v10 = vld [vmem:[%s276_s4 + $0x8] sm:$0xff]  ;;  %v46_v13 = vld [vmem:[%s276_s4] sm:$0xff]  ;;  %s112_s24 = sshll.u32 %s187_s1, 4  ;;  %s113_s24 = int_to_ptr.vmem [resolvable:$true] %s112_s24 }
  0x18   :  { %52 = vrot.lane.b32.xlu0 %v44_v2, %s183_s11  ;;  %s154_s4 = scalar_lea.vmem %s113_s24, 256  ;;  %p159_p9 = scmp.lt.s32.totalorder %s113_s24, %s113_s24 }
  0x19   :  { %60 = vrot.lane.b32.xlu1 %v37_v3, %s184_s12  ;;  %p155_p8 = scmp.ne.s32.totalorder %s113_s24, %s154_s4  ;;  %p160_p10 = scmp.lt.s32.totalorder %s154_s4, %s154_s4 }
  0x1b   :  { %p161_p11 = por %p160_p10, %p159_p9 }
  0x1c   :  { %64 = vrot.lane.b32.xlu0 %v36_v1, %s183_s11 }
  0x1d   :  { %66 = vrot.lane.b32.xlu1 %v37_v3, %s183_s11  ;;  %p162_p12 = pnand %p161_p11, %p155_p8 }
  0x20   :  { %72 = vrot.lane.b32.xlu0 %v40_v4, %s185_s16 }
  0x21   :  { %74 = vrot.lane.b32.xlu1 %v41_v5, %s185_s16 }
  0x24   :  { %80 = vrot.lane.b32.xlu0 %v38_v6, %s186_s3 }
  0x25   :  { %82 = vrot.lane.b32.xlu1 %v39_v7, %s186_s3 }
  0x86   :  { %v51_v8 = vpop.permute.xlu0 %50 }
  0x87   :  { %v59_v9 = vpop.permute.xlu1 %58  ;;  %v87_v15 = vsel %vm86_vm0, %v46_v13, %v51_v8 }
  0x88   :  { %v90_v19 = vsel %vm89_vm1, %v87_v15, %v51_v8 }
  0x89   :  { %v93_v23 = vsel %vm92_vm2, %v90_v19, %v59_v9 }
  0x8a   :  { %v53_v11 = vpop.permute.xlu0 %52 }
  0x8b   :  { %v61_v12 = vpop.permute.xlu1 %60  ;;  %v88_v14 = vsel %vm86_vm0, %v47_v10, %v53_v11 }
  0x8c   :  { %v91_v18 = vsel %vm89_vm1, %v88_v14, %v53_v11 }
  0x8d   :  { %v94_v20 = vsel %vm92_vm2, %v91_v18, %v61_v12 }
  0x8e   :  { %v65_v16 = vpop.permute.xlu0 %64 }
  0x8f   :  { %v67_v17 = vpop.permute.xlu1 %66  ;;  %v96_v24 = vsel %vm95_vm3, %v93_v23, %v65_v16 }
  0x90   :  { %v97_v25 = vsel %vm95_vm3, %v94_v20, %v67_v17 }
  0x92   :  { %v73_v21 = vpop.permute.xlu0 %72 }
  0x93   :  { %v75_v22 = vpop.permute.xlu1 %74  ;;  %v99_v26 = vsel %vm98_vm4, %v96_v24, %v73_v21 }
  0x94   :  { %v100_v27 = vsel %vm98_vm4, %v97_v25, %v75_v22 }
  0x96   :  { %v81_v28 = vpop.permute.xlu0 %80 }
  0x97   :  { %v83_v29 = vpop.permute.xlu1 %82  ;;  %v102_v30 = vsel %vm101_vm5, %v99_v26, %v81_v28 }
  0x98   :  { %v103_v31 = vsel %vm101_vm5, %v100_v27, %v83_v29  ;;  %105 = vst.msk [vmem:[#allocation5] sm:$0xff] %vm104_vm6, %v102_v30 }
  0x99   :  { %106 = vst.msk [vmem:[#allocation5 + $0x8] sm:$0xff] %vm104_vm6, %v103_v31 }
  0x9a   :  { %165 = shalt.err (!%p162_p12)
}
  0x9b   :  { %s166_s27 = scalar_lea.hbm %s277_s5, 256 }
  0x9c   :  { %p167_p13 = scmp.ne.s32.totalorder %s277_s5, %s166_s27  ;;  %p170_p0 = scmp.lt.u32.totalorder %s166_s27, %s277_s5 }
  0x9e   :  { %p172_p1 = pnand %p170_p0, %p167_p13 }
  0xa0   :  { %175 = shalt.err (!%p172_p1)
}
  0xa1   :  { %118 = dma.vmem_to_hbm [thread:$0]  %s113_s24, 256, %s277_s5, [#allocation4], %s181_s28, %s181_s28, %s182_s29  }
  0xa2   :  { %178 = dma.done.wait [#allocation4], 256  }
  0xa3   :  { %179 = vsyncadd [#allocation4], 4294967040 }
  0xa4   :  { %122 = vsyncpa [#allocation3], 1 }
  0xa5   :  { %123 = vsyncpa [#allocation4], 1 }

</bundles_post_ra>
